<compile_context>
chip_gen: v7x
topology: tpu7x:2x2x1
jax: 0.10.0
libtpu: 0.0.40
codegen_flags: <defaults>
</compile_context>

<pallas_src>
import functools

import numpy as np
import jax
import jax.numpy as jnp
from jax.experimental import pallas as pl
from jax.experimental.pallas import tpu as pltpu

N_CLASSES = 6


def _build_penalty_matrix(n_classes: int = N_CLASSES) -> np.ndarray:
    """Deterministic penalty-matrix construction, identical to the PyTorch __init__."""
    pm = np.array([[abs(i - j) for j in range(n_classes)] for i in range(n_classes)])
    pm = n_classes - 1 - pm
    pm = pm ** 2
    pm = pm / pm.sum(axis=1, keepdims=True)
    max_value = np.max(pm)
    if max_value > 0:
        pm = pm / max_value
    return pm.astype(np.float32)


def _round_up(x: int, m: int) -> int:
    return (x + m - 1) // m * m


def _loss_kernel(logits_ref, target_ref, penalty_t_ref, out_ref, *,
                 total_rows: int, block_cols: int):
    """One batch tile: partial (un-negated, un-normalized) loss sum -> out tile.

    logits_ref : (C, TB)  classes on sublanes, batch samples on lanes
    target_ref : (1, TB)  int32 class labels, lane-dense
    penalty_t_ref : (C, C) penalty matrix TRANSPOSED (column k == penalty row k)
    out_ref    : (1, 1, 128) broadcast scalar partial sum
    """
    i = pl.program_id(0)

    x = logits_ref[...].astype(jnp.float32)          # (C, TB)
    tgt = target_ref[...]                            # (1, TB) int32
    pen_t = penalty_t_ref[...]                       # (C, C) f32
    c = x.shape[0]

    # Global column (sample) index -> validity mask for the ragged last tile.
    col = jax.lax.broadcasted_iota(jnp.int32, (1, block_cols), 1) + i * block_cols
    valid = col < total_rows                         # (1, TB) bool

    # Mask padded/garbage columns to 0 so the softmax stays finite.
    x = jnp.where(valid, x, 0.0)

    # Numerically stable log_softmax over the class (sublane) axis.
    m = jnp.max(x, axis=0, keepdims=True)            # (1, TB)
    s = jnp.sum(jnp.exp(x - m), axis=0, keepdims=True)
    logp = x - (m + jnp.log(s))                      # (C, TB)

    # Gather penalty_matrix[target] per sample via C-way VPU select.
    # Invalid columns get target -1 -> select nothing -> contribute exactly 0.
    tgt_m = jnp.where(valid, tgt, -1)                # (1, TB)
    w = jnp.zeros_like(logp)                         # (C, TB)
    for k in range(c):                               # c == 6, static unroll
        w = jnp.where(tgt_m == k, pen_t[:, k:k + 1], w)

    partial = jnp.sum(w * logp)                      # scalar partial sum
    out_ref[...] = jnp.broadcast_to(partial.astype(jnp.float32), out_ref.shape)


def customized_cross_entropy_loss(logits: jax.Array,
                                  target: jax.Array,
                                  penalty_matrix: jax.Array,
                                  *,
                                  block_rows: int = 32768) -> jax.Array:
    """logits: (B, C) float (any float dtype), target: (B,) int, penalty_matrix: (C, C)."""
    b, c = logits.shape

    # Tile size along the batch (lane) axis: multiple of 128, up to block_rows.
    tb = _round_up(min(block_rows, b), 128)
    b_pad = _round_up(b, tb)
    num_blocks = b_pad // tb

    # Lane-dense layout: classes -> sublanes, batch -> lanes.  Transpose (+ the
    # small batch pad) is a single fused XLA data-movement pass; logits keep
    # their native dtype (cast to f32 happens inside the kernel).
    logits_t = jnp.transpose(logits)                           # (C, B)
    target_row = target.astype(jnp.int32).reshape(1, b)        # (1, B)
    if b_pad != b:
        logits_t = jnp.pad(logits_t, ((0, 0), (0, b_pad - b)))
        target_row = jnp.pad(target_row, ((0, 0), (0, b_pad - b)))
    penalty_t = jnp.transpose(penalty_matrix.astype(jnp.float32))  # (C, C)

    kernel = functools.partial(_loss_kernel, total_rows=b, block_cols=tb)

    cost = pl.CostEstimate(
        flops=int(b_pad) * c * 12,
        transcendentals=int(b_pad) * (c + 1),
        bytes_accessed=int(b_pad) * c * logits.dtype.itemsize
        + int(b_pad) * 4 + c * c * 4 + num_blocks * 512,
    )

    partials = pl.pallas_call(
        kernel,
        out_shape=jax.ShapeDtypeStruct((num_blocks, 1, 128), jnp.float32),
        grid=(num_blocks,),
        in_specs=[
            pl.BlockSpec((c, tb), lambda i: (0, i)),    # logits tile (C, TB)
            pl.BlockSpec((1, tb), lambda i: (0, i)),    # targets tile (1, TB)
            pl.BlockSpec((c, c), lambda i: (0, 0)),     # penalty^T (resident)
        ],
        out_specs=pl.BlockSpec((1, 1, 128), lambda i: (i, 0, 0)),
        compiler_params=pltpu.CompilerParams(
            dimension_semantics=("parallel",),          # v7x: shard across 2 TCs
            vmem_limit_bytes=32 * 1024 * 1024,
        ),
        cost_estimate=cost,
    )(logits_t, target_row, penalty_t)

    # Final reduction + normalization in plain JAX; divide by the *global* batch size.
    return -jnp.sum(partials[:, 0, 0]) / b


if __name__ == "__main__":
    key = jax.random.PRNGKey(0)
    k_logits, k_target = jax.random.split(key)

    penalty = jnp.asarray(_build_penalty_matrix(N_CLASSES))

    # Small case (single tile).
    batch = 8
    logits = jax.random.normal(k_logits, (batch, N_CLASSES), dtype=jnp.float32)
    target = jax.random.randint(k_target, (batch,), 0, N_CLASSES, dtype=jnp.int32)

    loss = jax.block_until_ready(customized_cross_entropy_loss(logits, target, penalty))

    ref = -jnp.sum(penalty[target] * jax.nn.log_softmax(logits, axis=-1)) / batch
    assert np.allclose(np.asarray(loss), np.asarray(ref), rtol=1e-5, atol=1e-5), (loss, ref)

    # Ragged, multi-block batch to exercise the grid + in-kernel masking path.
    batch2 = 300
    logits2 = jax.random.normal(k_logits, (batch2, N_CLASSES), dtype=jnp.float32)
    target2 = jax.random.randint(k_target, (batch2,), 0, N_CLASSES, dtype=jnp.int32)
    loss2 = jax.block_until_ready(
        customized_cross_entropy_loss(logits2, target2, penalty, block_rows=128))
    ref2 = -jnp.sum(penalty[target2] * jax.nn.log_softmax(logits2, axis=-1)) / batch2
    assert np.allclose(np.asarray(loss2), np.asarray(ref2), rtol=1e-5, atol=1e-5), (loss2, ref2)

    print("KERNEL_OK")
</pallas_src>

<mosaic_0001>
module attributes {stable_mosaic.version = 11 : i64} {
  func.func @_loss_kernel(%arg0: i32, %arg1: memref<6x128xf32, #tpu.memory_space<vmem>>, %arg2: memref<1x128xi32, #tpu.memory_space<vmem>>, %arg3: memref<6x6xf32, #tpu.memory_space<vmem>>, %arg4: memref<1x1x128xf32, #tpu.memory_space<vmem>>) attributes {dimension_semantics = [#tpu.dimension_semantics<parallel>], iteration_bounds = array<i64: 1>, scalar_prefetch = 0 : i64, scratch_operands = 0 : i64, tpu.core_type = #tpu.core_type<tc>, window_params = [{transform_indices = @transform_0, window_bounds = array<i64: 6, 128>}, {transform_indices = @transform_1, window_bounds = array<i64: 1, 128>}, {pipeline_mode = #tpu.pipeline_mode<synchronous>, transform_indices = @transform_2, window_bounds = array<i64: 6, 6>}, {transform_indices = @transform_3, window_bounds = array<i64: 1, 1, 128>}]} {
    %c0 = arith.constant 0 : index
    %c0_0 = arith.constant 0 : index
    %0 = vector.load %arg1[%c0, %c0_0] : memref<6x128xf32, #tpu.memory_space<vmem>>, vector<6x128xf32>
    %c0_1 = arith.constant 0 : index
    %c0_2 = arith.constant 0 : index
    %1 = vector.load %arg2[%c0_1, %c0_2] : memref<1x128xi32, #tpu.memory_space<vmem>>, vector<1x128xi32>
    %c0_3 = arith.constant 0 : index
    %c0_4 = arith.constant 0 : index
    %2 = vector.load %arg3[%c0_3, %c0_4] : memref<6x6xf32, #tpu.memory_space<vmem>>, vector<6x6xf32>
    %3 = tpu.iota {dimensions = array<i32: 1>} : vector<1x128xi32>
    %c128_i32 = arith.constant 128 : i32
    %4 = arith.muli %arg0, %c128_i32 : i32
    %5 = vector.broadcast %4 : i32 to vector<1x128xi32>
    %6 = arith.addi %3, %5 : vector<1x128xi32>
    %c8_i32 = arith.constant 8 : i32
    %7 = vector.broadcast %c8_i32 : i32 to vector<1x128xi32>
    %8 = arith.cmpi slt, %6, %7 : vector<1x128xi32>
    %cst = arith.constant 0.000000e+00 : f32
    %9 = vector.shape_cast %8 : vector<1x128xi1> to vector<1x128xi1>
    %10 = vector.broadcast %9 : vector<1x128xi1> to vector<6x128xi1>
    %11 = vector.broadcast %cst : f32 to vector<6x128xf32>
    %12 = arith.select %10, %0, %11 : vector<6x128xi1>, vector<6x128xf32>
    %cst_5 = arith.constant dense<0xFF800000> : vector<128xf32>
    %13 = vector.multi_reduction <maximumf>, %12, %cst_5 [0] : vector<6x128xf32> to vector<128xf32>
    %14 = vector.shape_cast %13 : vector<128xf32> to vector<1x128xf32>
    %15 = vector.broadcast %14 : vector<1x128xf32> to vector<6x128xf32>
    %16 = arith.subf %12, %15 : vector<6x128xf32>
    %17 = math.exp %16 : vector<6x128xf32>
    %cst_6 = arith.constant dense<0.000000e+00> : vector<128xf32>
    %18 = vector.multi_reduction <add>, %17, %cst_6 [0] : vector<6x128xf32> to vector<128xf32>
    %19 = vector.shape_cast %18 : vector<128xf32> to vector<1x128xf32>
    %20 = math.log %19 : vector<1x128xf32>
    %21 = arith.addf %14, %20 : vector<1x128xf32>
    %22 = vector.broadcast %21 : vector<1x128xf32> to vector<6x128xf32>
    %23 = arith.subf %12, %22 : vector<6x128xf32>
    %c-1_i32 = arith.constant -1 : i32
    %24 = vector.broadcast %c-1_i32 : i32 to vector<1x128xi32>
    %25 = arith.select %8, %1, %24 : vector<1x128xi1>, vector<1x128xi32>
    %cst_7 = arith.constant 0.000000e+00 : f32
    %26 = vector.broadcast %cst_7 : f32 to vector<6x128xf32>
    %c0_i32 = arith.constant 0 : i32
    %27 = vector.broadcast %c0_i32 : i32 to vector<1x128xi32>
    %28 = arith.cmpi eq, %25, %27 : vector<1x128xi32>
    %29 = vector.extract_strided_slice %2 {offsets = [0, 0], sizes = [6, 1], strides = [1, 1]} : vector<6x6xf32> to vector<6x1xf32>
    %30 = vector.shape_cast %28 : vector<1x128xi1> to vector<1x128xi1>
    %31 = vector.broadcast %30 : vector<1x128xi1> to vector<6x128xi1>
    %32 = vector.shape_cast %29 : vector<6x1xf32> to vector<6x1xf32>
    %33 = vector.broadcast %32 : vector<6x1xf32> to vector<6x128xf32>
    %34 = arith.select %31, %33, %26 : vector<6x128xi1>, vector<6x128xf32>
    %c1_i32 = arith.constant 1 : i32
    %35 = vector.broadcast %c1_i32 : i32 to vector<1x128xi32>
    %36 = arith.cmpi eq, %25, %35 : vector<1x128xi32>
    %37 = vector.extract_strided_slice %2 {offsets = [0, 1], sizes = [6, 1], strides = [1, 1]} : vector<6x6xf32> to vector<6x1xf32>
    %38 = vector.shape_cast %36 : vector<1x128xi1> to vector<1x128xi1>
    %39 = vector.broadcast %38 : vector<1x128xi1> to vector<6x128xi1>
    %40 = vector.shape_cast %37 : vector<6x1xf32> to vector<6x1xf32>
    %41 = vector.broadcast %40 : vector<6x1xf32> to vector<6x128xf32>
    %42 = arith.select %39, %41, %34 : vector<6x128xi1>, vector<6x128xf32>
    %c2_i32 = arith.constant 2 : i32
    %43 = vector.broadcast %c2_i32 : i32 to vector<1x128xi32>
    %44 = arith.cmpi eq, %25, %43 : vector<1x128xi32>
    %45 = vector.extract_strided_slice %2 {offsets = [0, 2], sizes = [6, 1], strides = [1, 1]} : vector<6x6xf32> to vector<6x1xf32>
    %46 = vector.shape_cast %44 : vector<1x128xi1> to vector<1x128xi1>
    %47 = vector.broadcast %46 : vector<1x128xi1> to vector<6x128xi1>
    %48 = vector.shape_cast %45 : vector<6x1xf32> to vector<6x1xf32>
    %49 = vector.broadcast %48 : vector<6x1xf32> to vector<6x128xf32>
    %50 = arith.select %47, %49, %42 : vector<6x128xi1>, vector<6x128xf32>
    %c3_i32 = arith.constant 3 : i32
    %51 = vector.broadcast %c3_i32 : i32 to vector<1x128xi32>
    %52 = arith.cmpi eq, %25, %51 : vector<1x128xi32>
    %53 = vector.extract_strided_slice %2 {offsets = [0, 3], sizes = [6, 1], strides = [1, 1]} : vector<6x6xf32> to vector<6x1xf32>
    %54 = vector.shape_cast %52 : vector<1x128xi1> to vector<1x128xi1>
    %55 = vector.broadcast %54 : vector<1x128xi1> to vector<6x128xi1>
    %56 = vector.shape_cast %53 : vector<6x1xf32> to vector<6x1xf32>
    %57 = vector.broadcast %56 : vector<6x1xf32> to vector<6x128xf32>
    %58 = arith.select %55, %57, %50 : vector<6x128xi1>, vector<6x128xf32>
    %c4_i32 = arith.constant 4 : i32
    %59 = vector.broadcast %c4_i32 : i32 to vector<1x128xi32>
    %60 = arith.cmpi eq, %25, %59 : vector<1x128xi32>
    %61 = vector.extract_strided_slice %2 {offsets = [0, 4], sizes = [6, 1], strides = [1, 1]} : vector<6x6xf32> to vector<6x1xf32>
    %62 = vector.shape_cast %60 : vector<1x128xi1> to vector<1x128xi1>
    %63 = vector.broadcast %62 : vector<1x128xi1> to vector<6x128xi1>
    %64 = vector.shape_cast %61 : vector<6x1xf32> to vector<6x1xf32>
    %65 = vector.broadcast %64 : vector<6x1xf32> to vector<6x128xf32>
    %66 = arith.select %63, %65, %58 : vector<6x128xi1>, vector<6x128xf32>
    %c5_i32 = arith.constant 5 : i32
    %67 = vector.broadcast %c5_i32 : i32 to vector<1x128xi32>
    %68 = arith.cmpi eq, %25, %67 : vector<1x128xi32>
    %69 = vector.extract_strided_slice %2 {offsets = [0, 5], sizes = [6, 1], strides = [1, 1]} : vector<6x6xf32> to vector<6x1xf32>
    %70 = vector.shape_cast %68 : vector<1x128xi1> to vector<1x128xi1>
    %71 = vector.broadcast %70 : vector<1x128xi1> to vector<6x128xi1>
    %72 = vector.shape_cast %69 : vector<6x1xf32> to vector<6x1xf32>
    %73 = vector.broadcast %72 : vector<6x1xf32> to vector<6x128xf32>
    %74 = arith.select %71, %73, %66 : vector<6x128xi1>, vector<6x128xf32>
    %75 = arith.mulf %74, %23 : vector<6x128xf32>
    %76 = vector.shape_cast %75 : vector<6x128xf32> to vector<1x6x128xf32>
    %cst_8 = arith.constant dense<0.000000e+00> : vector<1xf32>
    %77 = vector.multi_reduction <add>, %76, %cst_8 [1, 2] : vector<1x6x128xf32> to vector<1xf32>
    %78 = vector.shape_cast %77 : vector<1xf32> to vector<1x1x1xf32>
    %79 = vector.extract %78[0, 0, 0] : f32 from vector<1x1x1xf32>
    %80 = vector.broadcast %79 : f32 to vector<1x1x128xf32>
    %c0_9 = arith.constant 0 : index
    %c0_10 = arith.constant 0 : index
    %c0_11 = arith.constant 0 : index
    %81 = vector.load %arg4[%c0_9, %c0_10, %c0_11] : memref<1x1x128xf32, #tpu.memory_space<vmem>>, vector<1x1x128xf32>
    tpu.vector_store %arg4[%c0_9, %c0_10, %c0_11], %80 {strides = array<i32>} : memref<1x1x128xf32, #tpu.memory_space<vmem>>, vector<1x1x128xf32>,
    return
  }
  func.func @transform_0(%arg0: i32) -> (i32, i32) {
    %c0_i32 = arith.constant 0 : i32
    %c0_i32_0 = arith.constant 0 : i32
    return %c0_i32, %arg0 : i32, i32
  }
  func.func @transform_1(%arg0: i32) -> (i32, i32) {
    %c0_i32 = arith.constant 0 : i32
    %c0_i32_0 = arith.constant 0 : i32
    return %c0_i32, %arg0 : i32, i32
  }
  func.func @transform_2(%arg0: i32) -> (i32, i32) {
    %c0_i32 = arith.constant 0 : i32
    %c0_i32_0 = arith.constant 0 : i32
    %c0_i32_1 = arith.constant 0 : i32
    return %c0_i32, %c0_i32_0 : i32, i32
  }
  func.func @transform_3(%arg0: i32) -> (i32, i32, i32) {
    %c0_i32 = arith.constant 0 : i32
    %c0_i32_0 = arith.constant 0 : i32
    %c0_i32_1 = arith.constant 0 : i32
    return %arg0, %c0_i32, %c0_i32_0 : i32, i32, i32
  }
}

</mosaic_0001>

<bundles_post_ra>
// kernel: tpu_custom_call.1
= control target key start
LH: loop header
LB: loop body
LE: loop exit
PB: predicated region body
PF: predicated region fallthrough
CT: control target
= control target key end

     0   :  { %8 = vsyncpa [#allocation3], 0  ;;  %s354_s0 = inlined_call_operand.hbm [shape: f32[6,128], index: 0, kind: input, shape index: {}]   ;;  %s355_s1 = inlined_call_operand.vmem [shape: s32[1,128], index: 1, kind: input, shape index: {}]   ;;  %s356_s2 = inlined_call_operand.hbm [shape: f32[6,6], index: 2, kind: input, shape index: {}]   ;;  %s357_s3 = inlined_call_operand.hbm [shape: f32[1,1,128], index: 3, kind: output, shape index: {}]  }
   0x1   :  { %9 = vsyncpa [#allocation6], 0 }
   0x2   :  { %10 = vsyncpa [#allocation4], 0  ;;  %s269_s12 = smov [#allocation2]   ;;  %s270_s14 = smov [#allocation5]  }
   0x3   :  { %s17_s13 = sshll.u32 %s269_s12, 4  ;;  %s29_s15 = sshll.u32 %s270_s14, 4  ;;  %s18_s13 = int_to_ptr.vmem [resolvable:$true] %s17_s13  ;;  %s30_s15 = int_to_ptr.vmem [resolvable:$true] %s29_s15 }
   0x4   :  { %s197_s18 = scalar_lea.hbm %s354_s0, 128 }
   0x5   :  { %p198_p0 = scmp.ne.s32.totalorder %s354_s0, %s197_s18  ;;  %p201_p1 = scmp.lt.u32.totalorder %s197_s18, %s354_s0 }
   0x7   :  { %p203_p2 = pnand %p201_p1, %p198_p0 }
   0x9   :  { %206 = shalt.err (!%p203_p2)
}
   0xa   :  { %s207_s23 = scalar_lea.vmem %s18_s13, 128  ;;  %p212_p4 = scmp.lt.s32.totalorder %s18_s13, %s18_s13 }
   0xb   :  { %p208_p3 = scmp.ne.s32.totalorder %s18_s13, %s207_s23  ;;  %p213_p5 = scmp.lt.s32.totalorder %s207_s23, %s207_s23 }
   0xd   :  { %p214_p6 = por %p213_p5, %p212_p4 }
   0xf   :  { %p215_p7 = pnand %p214_p6, %p208_p3 }
  0x11   :  { %218 = shalt.err (!%p215_p7)
}
  0x12   :  { %20 = dma.hbm_to_vmem [thread:$0]  %s354_s0, 128, %s18_s13, [#allocation3]  }
  0x13   :  { %s219_s28 = scalar_lea.hbm %s356_s2, 128 }
  0x14   :  { %p220_p8 = scmp.ne.s32.totalorder %s356_s2, %s219_s28  ;;  %p223_p9 = scmp.lt.u32.totalorder %s219_s28, %s356_s2 }
  0x16   :  { %p225_p10 = pnand %p223_p9, %p220_p8 }
  0x18   :  { %228 = shalt.err (!%p225_p10)
}
  0x19   :  { %s229_s6 = scalar_lea.vmem %s30_s15, 128  ;;  %p234_p12 = scmp.lt.s32.totalorder %s30_s15, %s30_s15 }
  0x1a   :  { %p230_p11 = scmp.ne.s32.totalorder %s30_s15, %s229_s6  ;;  %p235_p13 = scmp.lt.s32.totalorder %s229_s6, %s229_s6 }
  0x1c   :  { %p236_p0 = por %p235_p13, %p234_p12 }
  0x1e   :  { %p237_p1 = pnand %p236_p0, %p230_p11 }
  0x20   :  { %240 = shalt.err (!%p237_p1)
}
  0x21   :  { %32 = dma.hbm_to_vmem [thread:$0]  %s356_s2, 128, %s30_s15, [#allocation6]  }
  0x22   :  { %263 = dma.done.wait [#allocation3], 128  }
  0x23   :  { %264 = vsyncadd [#allocation3], 4294967168 }
  0x24   :  { %265 = dma.done.wait [#allocation6], 128  }
  0x25   :  { %266 = vsyncadd [#allocation6], 4294967168  ;;  %v271_v0 = vmov 2   ;;  %v272_v1 = vmov 0   ;;  %v41_v2 = vld [vmem:[#allocation5] sm:$0x3f]  ;;  %v42_v7 = vlaneseq }
  0x26   :  { %189 = vset.pattern.permute.xlu1 %v271_v0  ;;  %187 = vset.pattern.permute.xlu0 %v272_v1  ;;  %v273_v3 = vmov 3   ;;  %v274_v4 = vmov 1   ;;  %v275_v5 = vmov 4   ;;  %v276_v6 = vmov 5   ;;  %v39_v9 = vld [vmem:[#allocation2] sm:$0x3f] }
  0x27   :  { %107 = vperm.xlu1 %189, %v41_v2   ;;  %83 = vperm.xlu0 %187, %v41_v2   ;;  %v43_v8 = vand.u32 127, %v42_v7  ;;  %vm51_vm1 = vcmask 1045504   ;;  %v40_v28 = vld [vmem:[%s355_s1] sm:$0x1]  ;;  %v77_v30 = vshrl.u32 %v42_v7, 7  ;;  %s277_s1 = smov [#allocation7]  }
  0x28   :  { %s166_s9 = sshll.u32 %s277_s1, 4  ;;  %s167_s9 = int_to_ptr.vmem [resolvable:$true] %s166_s9 }
  0x29   :  { %vm47_vm0 = vcmp.lt.s32.totalorder %v43_v8, 8  ;;  %v78_v31 = vsub.s32 0, %v77_v30  ;;  %s241_s11 = scalar_lea.vmem %s167_s9, 16  ;;  %s245_s12 = scalar_lea.vmem %s167_s9, 32 }
  0x2a   :  { %v324_v10 = vsel %vm47_vm0, %v39_v9, 0.0  ;;  %v73_v29 = vsel %vm47_vm0, %v40_v28, 4294967295  ;;  %p242_p2 = scmp.ne.s32.totalorder %s167_s9, %s241_s11  ;;  %p246_p3 = scmp.lt.s32.totalorder %s167_s9, %s167_s9 }
  0x2b   :  { %190 = vset.pattern.permute.xlu1 %v273_v3  ;;  %188 = vset.pattern.permute.xlu0 %v274_v4  ;;  %v52_v11 = vsel %vm51_vm1, %v324_v10, -inf  ;;  %vm74_vm2 = vcmp.eq.s32.totalorder %v73_v29, 0  ;;  %vm87_vm3 = vcmp.eq.s32.totalorder %v73_v29, 1  ;;  %vm99_vm4 = vcmp.eq.s32.totalorder %v73_v29, 2  ;;  %p247_p4 = scmp.lt.s32.totalorder %s245_s12, %s241_s11 }
  0x2c   :  { %119 = vperm.xlu1 %190, %v41_v2   ;;  %95 = vperm.xlu0 %188, %v41_v2   ;;  %v53_v12 = vrot.slane %v52_v11, 4  ;;  %v75_v32 = vsel %vm74_vm2, 1, %v272_v1  ;;  %v88_v33 = vsel %vm87_vm3, 1, %v272_v1  ;;  %v100_v34 = vsel %vm99_vm4, 1, %v272_v1 }
  0x2d   :  { %vm111_vm5 = vcmp.eq.s32.totalorder %v73_v29, 3  ;;  %v79_v36 = vrot.slane %v75_v32, %v78_v31  ;;  %vm123_vm6 = vcmp.eq.s32.totalorder %v73_v29, 4  ;;  %v92_v37 = vrot.slane %v88_v33, %v78_v31  ;;  %p248_p5 = por %p247_p4, %p246_p3 }
  0x2e   :  { %v54_v13 = vmax.f32 %v52_v11, %v53_v12  ;;  %vm135_vm7 = vcmp.eq.s32.totalorder %v73_v29, 5  ;;  %v104_v40 = vrot.slane %v100_v34, %v78_v31  ;;  %v112_v41 = vsel %vm111_vm5, 1, %v272_v1 }
  0x2f   :  { %v124_v42 = vsel %vm123_vm6, 1, %v272_v1  ;;  %vm80_vm8 = vcmp.eq.s32.totalorder %v79_v36, 1  ;;  %v136_v44 = vsel %vm135_vm7, 1, %v272_v1  ;;  %vm93_vm9 = vcmp.eq.s32.totalorder %v92_v37, 1  ;;  %p249_p6 = pnand %p248_p5, %p242_p2 }
  0x30   :  { %191 = vset.pattern.permute.xlu1 %v275_v5  ;;  %192 = vset.pattern.permute.xlu0 %v276_v6  ;;  %v55_v14 = vrot.slane %v54_v13, 2  ;;  %v116_v45 = vrot.slane %v112_v41, %v78_v31  ;;  %vm105_vm10 = vcmp.eq.s32.totalorder %v104_v40, 1  ;;  %v128_v46 = vrot.slane %v124_v42, %v78_v31 }
  0x31   :  { %131 = vperm.xlu1 %191, %v41_v2   ;;  %143 = vperm.xlu0 %192, %v41_v2   ;;  %v140_v50 = vrot.slane %v136_v44, %v78_v31 }
  0x32   :  { %v56_v15 = vmax.f32 %v54_v13, %v55_v14  ;;  %vm117_vm11 = vcmp.eq.s32.totalorder %v116_v45, 1  ;;  %vm129_vm12 = vcmp.eq.s32.totalorder %v128_v46, 1 }
  0x33   :  { %vm141_vm13 = vcmp.eq.s32.totalorder %v140_v50, 1 }
  0x34   :  { %v57_v16 = vrot.slane %v56_v15, 1 }
  0x36   :  { %v58_v17 = vmax.f32 %v56_v15, %v57_v16 }
  0x38   :  { %v59_v18 = vsub.f32 %v324_v10, %v58_v17 }
  0x3a   :  { %v60_v19 = vmul.f32 1.442695, %v59_v18 }
  0x3c   :  { %193 = vpow2.f32 %v60_v19 }
  0x46   :  { %v194_v20 = vpop.eup %193 }
  0x47   :  { %v62_v21 = vsel %vm51_vm1, %v194_v20, 0.0 }
  0x48   :  { %v63_v22 = vrot.slane %v62_v21, 4 }
  0x4a   :  { %v64_v23 = vadd.f32 %v63_v22, %v62_v21 }
  0x4c   :  { %v65_v24 = vrot.slane %v64_v23, 2 }
  0x4e   :  { %v66_v25 = vadd.f32 %v65_v24, %v64_v23 }
  0x50   :  { %v67_v26 = vrot.slane %v66_v25, 1 }
  0x52   :  { %v68_v27 = vadd.f32 %v67_v26, %v66_v25 }
  0x54   :  { %195 = vlog2.f32 %v68_v27 }
  0x5e   :  { %v196_v35 = vpop.eup %195 }
  0x5f   :  { %v70_v43 = vmul.f32 0.6931472, %v196_v35 }
  0x61   :  { %v71_v51 = vadd.f32 %v70_v43, %v58_v17 }
  0x63   :  { %v72_v54 = vsub.f32 %v324_v10, %v71_v51 }
  0xa6   :  { %v108_v38 = vpop.permute.xlu1 %107  ;;  %v84_v39 = vpop.permute.xlu0 %83 }
  0xa7   :  { %v86_v47 = vsel %vm80_vm8, %v84_v39, 0.0 }
  0xab   :  { %v120_v48 = vpop.permute.xlu1 %119  ;;  %v96_v49 = vpop.permute.xlu0 %95 }
  0xac   :  { %v98_v52 = vsel %vm93_vm9, %v96_v49, %v86_v47 }
  0xad   :  { %v110_v53 = vsel %vm105_vm10, %v108_v38, %v98_v52 }
  0xae   :  { %v122_v56 = vsel %vm117_vm11, %v120_v48, %v110_v53 }
  0xb0   :  { %v132_v55 = vpop.permute.xlu1 %131  ;;  %v144_v57 = vpop.permute.xlu0 %143 }
  0xb1   :  { %v134_v58 = vsel %vm129_vm12, %v132_v55, %v122_v56 }
  0xb2   :  { %v146_v59 = vsel %vm141_vm13, %v144_v57, %v134_v58 }
  0xb3   :  { %v147_v60 = vmul.f32 %v146_v59, %v72_v54 }
  0xb5   :  { %v148_v61 = vsel %vm51_vm1, %v147_v60, 0.0 }
  0xb6   :  { %149 = vadd.xlane.f32.xlu1 %v148_v61 }
 0x143   :  { %v150_v62 = vpop.xlane.xlu1 %149 }
 0x144   :  { %v151_v63 = vrot.slane %v150_v62, 4 }
 0x146   :  { %v152_v0 = vadd.f32 %v151_v63, %v150_v62 }
 0x148   :  { %v153_v1 = vrot.slane %v152_v0, 2 }
 0x14a   :  { %v154_v2 = vadd.f32 %v153_v1, %v152_v0 }
 0x14c   :  { %v155_v3 = vrot.slane %v154_v2, 1 }
 0x14e   :  { %v156_v4 = vadd.f32 %v155_v3, %v154_v2 }
 0x150   :  { %176 = vpush %v156_v4 }
 0x181   :  { %s177_s10 = spop %176 }
 0x182   :  { %v158_v5 = vstv %s177_s10 }
 0x183   :  { %159 = vst [vmem:[#allocation7] sm:$0x1] %v158_v5 }
 0x184   :  { %252 = shalt.err (!%p249_p6)
}
 0x185   :  { %s253_s15 = scalar_lea.hbm %s357_s3, 16 }
 0x186   :  { %p254_p7 = scmp.ne.s32.totalorder %s357_s3, %s253_s15  ;;  %p257_p8 = scmp.lt.u32.totalorder %s253_s15, %s357_s3 }
 0x188   :  { %p259_p9 = pnand %p257_p8, %p254_p7 }
 0x18a   :  { %262 = shalt.err (!%p259_p9)
}
 0x18b   :  { %169 = dma.vmem_to_hbm [thread:$0]  %s167_s9, 16, %s357_s3, [#allocation4]  }
 0x18c   :  { %267 = dma.done.wait [#allocation4], 16  }
 0x18d   :  { %268 = vsyncadd [#allocation4], 4294967280 }
 0x18e   :  { %173 = vsyncpa [#allocation3], 1 }
 0x18f   :  { %174 = vsyncpa [#allocation6], 1 }
 0x190   :  { %175 = vsyncpa [#allocation4], 1 }

</bundles_post_ra>
